<compile_context>
chip_gen: v7x
topology: tpu7x:2x2x1
jax: 0.10.0
libtpu: 0.0.40
codegen_flags: <defaults>
</compile_context>

<pallas_src>
import functools
import math

import jax
import jax.numpy as jnp
from jax.experimental import pallas as pl
from jax.experimental.pallas import tpu as pltpu

_NEG = -1e9       # finite "masked" value: avoids NaN rows when a query row is fully masked
_LN_EPS = 1e-5


# ---------------------------------------------------------------------------
# Pallas kernels
# ---------------------------------------------------------------------------

def _encoder_layer_kernel(xq_ref, xkv_ref, kbias_ref,
                          wq_ref, bq_ref, wkv_ref, bkv_ref, wo_ref, bo_ref,
                          w1_ref, b1_ref, w2_ref, b2_ref,
                          g1_ref, beta1_ref, g2_ref, beta2_ref,
                          o_ref, *, num_heads):
    """One fused encoder layer step for (batch b, query tile qi).

    Blocks: xq (1, TQ, D) query rows / residual stream, xkv (1, S, D) full sequence
    for K/V, kbias (1, 1, S) additive key-padding bias. Weights are replicated,
    pre-transposed, bf16, single-buffered.
    """
    xq = xq_ref[0]                      # (TQ, D) f32
    xkv = xkv_ref[0]                    # (S,  D) f32
    tq, d_model = xq.shape
    seq = xkv.shape[0]
    d_k = d_model // num_heads
    scale = 1.0 / math.sqrt(d_k)

    # ---- additive attention bias built in-kernel (no (S, S) mask from HBM) ----
    q0 = pl.program_id(1) * tq
    rows = jax.lax.broadcasted_iota(jnp.int32, (tq, seq), 0) + q0
    cols = jax.lax.broadcasted_iota(jnp.int32, (tq, seq), 1)
    bias = jnp.where(cols > rows, jnp.float32(_NEG), jnp.float32(0.0)) + kbias_ref[0]

    # ---- projections: Q for the query tile, fused K|V for the full sequence ---
    q = jnp.dot(xq.astype(jnp.bfloat16), wq_ref[...],
                preferred_element_type=jnp.float32) + bq_ref[...]
    q = (q * scale).astype(jnp.bfloat16)                    # fold 1/sqrt(d_k) once
    kv = jnp.dot(xkv.astype(jnp.bfloat16), wkv_ref[...],
                 preferred_element_type=jnp.float32) + bkv_ref[...]
    k = kv[:, :d_model].astype(jnp.bfloat16)
    v = kv[:, d_model:].astype(jnp.bfloat16)

    # ---- per-head scores/softmax/context; heads concatenated once so W_o is a
    #      single K=D-deep matmul (no per-head (TQ,d_k)@(d_k,D) + f32 accumulates)
    # TODO(synk): a fully heads-batched dot_general needs a head-major activation
    #             layout (d_k >= 128 lanes); at d_k < 128 the in-kernel
    #             (S,D)->(S,H,d_k) relayout is riskier than this small static loop.
    ctx = []
    for h in range(num_heads):
        sl = slice(h * d_k, (h + 1) * d_k)
        s = jax.lax.dot_general(q[:, sl], k[:, sl], (((1,), (1,)), ((), ())),
                                preferred_element_type=jnp.float32)   # (TQ, S)
        s = s + bias
        s = s - jnp.max(s, axis=-1, keepdims=True)
        e = jnp.exp(s)
        p = e * pl.reciprocal(jnp.sum(e, axis=-1, keepdims=True), approx=True)
        ctx.append(jnp.dot(p.astype(jnp.bfloat16), v[:, sl],
                           preferred_element_type=jnp.float32))       # (TQ, d_k)
    ctx = jnp.concatenate(ctx, axis=-1).astype(jnp.bfloat16)          # (TQ, D)
    attn = jnp.dot(ctx, wo_ref[...], preferred_element_type=jnp.float32) + bo_ref[...]

    # ---- residual + LayerNorm 1 (f32) ------------------------------------------
    h1 = xq + attn
    mu1 = jnp.mean(h1, axis=-1, keepdims=True)
    c1 = h1 - mu1
    var1 = jnp.mean(c1 * c1, axis=-1, keepdims=True)
    y1 = c1 * jax.lax.rsqrt(var1 + _LN_EPS) * g1_ref[...] + beta1_ref[...]

    # ---- position-wise FFN (bf16 MXU, f32 accumulate) ---------------------------
    f = jnp.dot(y1.astype(jnp.bfloat16), w1_ref[...],
                preferred_element_type=jnp.float32) + b1_ref[...]
    f = jnp.maximum(f, 0.0)
    f = jnp.dot(f.astype(jnp.bfloat16), w2_ref[...],
                preferred_element_type=jnp.float32) + b2_ref[...]

    # ---- residual + LayerNorm 2 (f32) -------------------------------------------
    h2 = y1 + f
    mu2 = jnp.mean(h2, axis=-1, keepdims=True)
    c2 = h2 - mu2
    var2 = jnp.mean(c2 * c2, axis=-1, keepdims=True)
    y2 = c2 * jax.lax.rsqrt(var2 + _LN_EPS) * g2_ref[...] + beta2_ref[...]

    o_ref[0] = y2.astype(o_ref.dtype)


def _linear_kernel(x_ref, w_ref, b_ref, o_ref):
    o_ref[...] = (jnp.dot(x_ref[...].astype(jnp.bfloat16), w_ref[...],
                          preferred_element_type=jnp.float32)
                  + b_ref[...]).astype(o_ref.dtype)


# ---------------------------------------------------------------------------
# Wrappers
# ---------------------------------------------------------------------------

def _replicated_spec(shape):
    """Weight replicated across the grid; single-buffered (constant block index,
    so double-buffering would only waste VMEM)."""
    nd = len(shape)
    idx = lambda *_, _nd=nd: (0,) * _nd
    try:
        return pl.BlockSpec(shape, idx, pipeline_mode=pl.Buffered(1))
    except TypeError:            # older jax without pipeline_mode: default buffering
        return pl.BlockSpec(shape, idx)


def _vmem_budget_bytes(S, tq, D, d_ff):
    """Explicit scoped-VMEM budget derived from the actual block sizes."""
    weights = 2 * (D * D + 2 * D * D + D * D + D * d_ff + d_ff * D)   # bf16, 1 buffer each
    vectors = 4 * (8 * D + 2 * D + d_ff)                              # biases + LN params
    acts = 4 * 2 * (2 * tq * D + S * D + S)                           # double-buffered blocks
    temps = 4 * (2 * tq * D + 2 * S * D + 4 * tq * S + 2 * tq * d_ff + 3 * tq * D)
    need = int(1.4 * (weights + vectors + acts + temps)) + (4 << 20)
    try:
        cap = pltpu.get_tpu_info().vmem_capacity_bytes
    except Exception:
        cap = 64 << 20                                                # conservative (v7x)
    return int(min(max(need, 32 << 20), cap - (8 << 20)))


def encoder_layer(x, key_bias, kp, *, num_heads, tq=None):
    """x: (B, S, D) f32; key_bias: (B, 1, S) f32 additive pad bias; kp: packed weights."""
    B, S, D = x.shape
    d_ff = kp["w1_t"].shape[1]
    H = num_heads
    d_k = D // H
    if tq is None:
        # flash-style query tiling; 256 matches the v6e/v7x MXU width (use 128 on v5e)
        tq = 256 if S % 256 == 0 else S
    assert S % tq == 0, "sequence length must be divisible by the query tile"
    nq = S // tq

    kernel = functools.partial(_encoder_layer_kernel, num_heads=H)

    xq_spec = pl.BlockSpec((1, tq, D), lambda b, qi: (b, qi, 0))
    xkv_spec = pl.BlockSpec((1, S, D), lambda b, qi: (b, 0, 0))
    kb_spec = pl.BlockSpec((1, 1, S), lambda b, qi: (b, 0, 0))

    flops = B * nq * (2 * tq * D * D + 4 * S * D * D + 4 * H * tq * S * d_k
                      + 2 * tq * D * D + 4 * tq * D * d_ff)
    transcendentals = B * nq * (H * tq * S + 2 * tq)
    bytes_accessed = (2 * (4 * D * D + 2 * D * d_ff)
                      + 4 * B * nq * (2 * tq * D + S * D + S))
    cost = pl.CostEstimate(flops=int(flops), transcendentals=int(transcendentals),
                           bytes_accessed=int(bytes_accessed))

    return pl.pallas_call(
        kernel,
        out_shape=jax.ShapeDtypeStruct((B, S, D), x.dtype),
        grid_spec=pltpu.PrefetchScalarGridSpec(
            num_scalar_prefetch=0,
            grid=(B, nq),
            in_specs=[xq_spec, xkv_spec, kb_spec,
                      _replicated_spec((D, D)), _replicated_spec((1, D)),
                      _replicated_spec((D, 2 * D)), _replicated_spec((1, 2 * D)),
                      _replicated_spec((D, D)), _replicated_spec((1, D)),
                      _replicated_spec((D, d_ff)), _replicated_spec((1, d_ff)),
                      _replicated_spec((d_ff, D)), _replicated_spec((1, D)),
                      _replicated_spec((1, D)), _replicated_spec((1, D)),
                      _replicated_spec((1, D)), _replicated_spec((1, D))],
            out_specs=xq_spec,
        ),
        compiler_params=pltpu.CompilerParams(
            dimension_semantics=("parallel", "parallel"),
            vmem_limit_bytes=_vmem_budget_bytes(S, tq, D, d_ff)),
        cost_estimate=cost,
    )(x, x, key_bias,
      kp["wq_t"], kp["bq"], kp["wkv_t"], kp["bkv"], kp["wo_t"], kp["bo"],
      kp["w1_t"], kp["b1"], kp["w2_t"], kp["b2"],
      kp["ln1_g"], kp["ln1_b"], kp["ln2_g"], kp["ln2_b"])


def final_projection(x, w_t_bf16, b_row, *, tm=256, tn=512):
    """(B, S, D) -> (B, S, V), tiled over (row tiles, vocab tiles) so a real-size
    bf16 (D, V) weight / f32 (B*S, V) output never has to sit in VMEM at once."""
    B, S, D = x.shape
    V = w_t_bf16.shape[1]
    BS = B * S
    tm = tm if BS % tm == 0 else BS
    tn = tn if V % tn == 0 else V
    out = pl.pallas_call(
        _linear_kernel,
        out_shape=jax.ShapeDtypeStruct((BS, V), jnp.float32),
        grid_spec=pltpu.PrefetchScalarGridSpec(
            num_scalar_prefetch=0,
            grid=(BS // tm, V // tn),
            in_specs=[pl.BlockSpec((tm, D), lambda i, j: (i, 0)),
                      pl.BlockSpec((D, tn), lambda i, j: (0, j)),
                      pl.BlockSpec((1, tn), lambda i, j: (0, j))],
            out_specs=pl.BlockSpec((tm, tn), lambda i, j: (i, j)),
        ),
        compiler_params=pltpu.CompilerParams(
            dimension_semantics=("parallel", "parallel")),
    )(x.reshape(BS, D), w_t_bf16, b_row)
    return out.reshape(B, S, V)


# ---------------------------------------------------------------------------
# One-time weight packing (hoisted out of the forward pass)
# ---------------------------------------------------------------------------

def _pack_layer(lp):
    D = lp["wq"].shape[0]
    return dict(
        wq_t=lp["wq"].T.astype(jnp.bfloat16), bq=lp["bq"].reshape(1, D),
        wkv_t=jnp.concatenate([lp["wk"].T, lp["wv"].T], axis=1).astype(jnp.bfloat16),
        bkv=jnp.concatenate([lp["bk"], lp["bv"]]).reshape(1, 2 * D),
        wo_t=lp["wo"].T.astype(jnp.bfloat16), bo=lp["bo"].reshape(1, D),
        w1_t=lp["w1"].T.astype(jnp.bfloat16), b1=lp["b1"].reshape(1, -1),
        w2_t=lp["w2"].T.astype(jnp.bfloat16), b2=lp["b2"].reshape(1, D),
        ln1_g=lp["ln1_g"].reshape(1, D), ln1_b=lp["ln1_b"].reshape(1, D),
        ln2_g=lp["ln2_g"].reshape(1, D), ln2_b=lp["ln2_b"].reshape(1, D),
    )


def pack_params(params):
    """Transpose / fuse / bf16-cast all weights once at load time."""
    return dict(
        embedding=params["embedding"],
        fc_w_t=params["fc_w"].T.astype(jnp.bfloat16),
        fc_b=params["fc_b"].reshape(1, -1),
        layers=[_pack_layer(lp) for lp in params["layers"]],
    )


# ---------------------------------------------------------------------------
# Forward pass
# ---------------------------------------------------------------------------

def _positional_encoding(max_len, d_model):
    pos = jnp.arange(max_len, dtype=jnp.float32)[:, None]
    div = jnp.exp(jnp.arange(0, d_model, 2, dtype=jnp.float32)
                  * (-math.log(10000.0) / d_model))
    pe = jnp.zeros((max_len, d_model), jnp.float32)
    pe = pe.at[:, 0::2].set(jnp.sin(pos * div))
    pe = pe.at[:, 1::2].set(jnp.cos(pos * div))
    return pe


def _key_padding_bias(src):
    """(B, S) tokens -> (B, 1, S) additive key bias (0 valid / -1e9 pad)."""
    return jnp.where(src == 0, _NEG, 0.0).astype(jnp.float32)[:, None, :]


def encoder_only_transformer(src, packed, *, num_heads, max_seq_length):
    """Full forward pass (inference: dropout = identity)."""
    B, S = src.shape
    D = packed["embedding"].shape[1]
    # TODO(synk): embedding gather + PE table build stay in plain JAX (no clean/cheap
    #             Pallas gather); dropout is inference-mode identity.
    key_bias = _key_padding_bias(src)
    x = packed["embedding"][src] + _positional_encoding(max_seq_length, D)[:S][None]
    for kp in packed["layers"]:
        x = encoder_layer(x, key_bias, kp, num_heads=num_heads)
    return final_projection(x, packed["fc_w_t"], packed["fc_b"])


# ---------------------------------------------------------------------------
# Init + pure-JAX reference
# ---------------------------------------------------------------------------

def _init_linear(key, d_in, d_out):
    kw, kb = jax.random.split(key)
    bound = 1.0 / math.sqrt(d_in)
    w = jax.random.uniform(kw, (d_out, d_in), jnp.float32, -bound, bound)
    b = jax.random.uniform(kb, (d_out,), jnp.float32, -bound, bound)
    return w, b


def init_params(key, *, vocab_size, d_model, num_heads, num_layers, d_ff):
    assert d_model % num_heads == 0
    keys = jax.random.split(key, 2 + 6 * num_layers)
    emb = jax.random.normal(keys[0], (vocab_size, d_model), jnp.float32)
    fc_w, fc_b = _init_linear(keys[1], d_model, vocab_size)
    layers = []
    ki = 2
    for _ in range(num_layers):
        wq, bq = _init_linear(keys[ki + 0], d_model, d_model)
        wk, bk = _init_linear(keys[ki + 1], d_model, d_model)
        wv, bv = _init_linear(keys[ki + 2], d_model, d_model)
        wo, bo = _init_linear(keys[ki + 3], d_model, d_model)
        w1, b1 = _init_linear(keys[ki + 4], d_model, d_ff)
        w2, b2 = _init_linear(keys[ki + 5], d_ff, d_model)
        ki += 6
        layers.append(dict(wq=wq, bq=bq, wk=wk, bk=bk, wv=wv, bv=bv, wo=wo, bo=bo,
                           w1=w1, b1=b1, w2=w2, b2=b2,
                           ln1_g=jnp.ones((d_model,), jnp.float32),
                           ln1_b=jnp.zeros((d_model,), jnp.float32),
                           ln2_g=jnp.ones((d_model,), jnp.float32),
                           ln2_b=jnp.zeros((d_model,), jnp.float32)))
    return dict(embedding=emb, fc_w=fc_w, fc_b=fc_b, layers=layers)


def _layer_norm_ref(x, g, b, eps=_LN_EPS):
    mu = jnp.mean(x, axis=-1, keepdims=True)
    var = jnp.mean((x - mu) ** 2, axis=-1, keepdims=True)
    return (x - mu) * jax.lax.rsqrt(var + eps) * g + b


def _causal_padding_mask(src):
    S = src.shape[1]
    causal = jnp.triu(jnp.ones((S, S), dtype=bool), k=1)
    padding = (src == 0)[:, None, :]
    combined = jnp.logical_or(causal[None], padding)
    return jnp.where(combined, -jnp.inf, 0.0).astype(jnp.float32)


def _reference_forward(src, params, *, num_heads, max_seq_length):
    B, S = src.shape
    D = params["embedding"].shape[1]
    d_k = D // num_heads
    mask = _causal_padding_mask(src)
    x = params["embedding"][src] + _positional_encoding(max_seq_length, D)[:S][None]

    def lin(h, w, b):
        return h @ w.T + b

    def split(h):
        return h.reshape(B, S, num_heads, d_k).transpose(0, 2, 1, 3)

    for lp in params["layers"]:
        q, k, v = split(lin(x, lp["wq"], lp["bq"])), split(lin(x, lp["wk"], lp["bk"])), \
                  split(lin(x, lp["wv"], lp["bv"]))
        s = jnp.einsum("bhqd,bhkd->bhqk", q, k) / math.sqrt(d_k) + mask[:, None]
        p = jax.nn.softmax(s, axis=-1)
        o = jnp.einsum("bhqk,bhkd->bhqd", p, v).transpose(0, 2, 1, 3).reshape(B, S, D)
        x = _layer_norm_ref(x + lin(o, lp["wo"], lp["bo"]), lp["ln1_g"], lp["ln1_b"])
        ff = lin(jnp.maximum(lin(x, lp["w1"], lp["b1"]), 0.0), lp["w2"], lp["b2"])
        x = _layer_norm_ref(x + ff, lp["ln2_g"], lp["ln2_b"])
    return lin(x, params["fc_w"], params["fc_b"])


# ---------------------------------------------------------------------------

if __name__ == "__main__":
    VOCAB, D, H, LAYERS, D_FF, MAX_LEN = 16, 32, 4, 2, 64, 32
    B, S = 2, 8

    root = jax.random.PRNGKey(0)
    k_params, k_src = jax.random.split(root)
    params = init_params(k_params, vocab_size=VOCAB, d_model=D, num_heads=H,
                         num_layers=LAYERS, d_ff=D_FF)
    # tokens in [1, VOCAB) -> no pad tokens, so the -inf reference mask never yields
    # an all-masked row and matches the finite -1e9 kernel masking exactly
    src = jax.random.randint(k_src, (B, S), 1, VOCAB, dtype=jnp.int32)

    packed = pack_params(params)          # one-time packing, outside the forward pass
    fwd = jax.jit(functools.partial(encoder_only_transformer,
                                    num_heads=H, max_seq_length=MAX_LEN))
    out = jax.block_until_ready(fwd(src, packed))

    ref = _reference_forward(src, params, num_heads=H, max_seq_length=MAX_LEN)
    assert out.shape == (B, S, VOCAB)
    max_err = float(jnp.max(jnp.abs(out - ref)))
    assert bool(jnp.allclose(out, ref, atol=5e-2, rtol=5e-2)), \
        f"mismatch vs reference (bf16 MXU path), max abs err {max_err}"

    print("KERNEL_OK")
</pallas_src>

<mosaic_0001>
module attributes {stable_mosaic.version = 11 : i64} {
  func.func @_encoder_layer_kernel(%arg0: i32, %arg1: i32, %arg2: memref<1x8x32xf32, #tpu.memory_space<vmem>>, %arg3: memref<1x8x32xf32, #tpu.memory_space<vmem>>, %arg4: memref<1x1x8xf32, #tpu.memory_space<vmem>>, %arg5: memref<32x32xbf16, #tpu.memory_space<vmem>>, %arg6: memref<1x32xf32, #tpu.memory_space<vmem>>, %arg7: memref<32x64xbf16, #tpu.memory_space<vmem>>, %arg8: memref<1x64xf32, #tpu.memory_space<vmem>>, %arg9: memref<32x32xbf16, #tpu.memory_space<vmem>>, %arg10: memref<1x32xf32, #tpu.memory_space<vmem>>, %arg11: memref<32x64xbf16, #tpu.memory_space<vmem>>, %arg12: memref<1x64xf32, #tpu.memory_space<vmem>>, %arg13: memref<64x32xbf16, #tpu.memory_space<vmem>>, %arg14: memref<1x32xf32, #tpu.memory_space<vmem>>, %arg15: memref<1x32xf32, #tpu.memory_space<vmem>>, %arg16: memref<1x32xf32, #tpu.memory_space<vmem>>, %arg17: memref<1x32xf32, #tpu.memory_space<vmem>>, %arg18: memref<1x32xf32, #tpu.memory_space<vmem>>, %arg19: memref<1x8x32xf32, #tpu.memory_space<vmem>>) attributes {dimension_semantics = [#tpu.dimension_semantics<parallel>, #tpu.dimension_semantics<parallel>], iteration_bounds = array<i64: 2, 1>, scalar_prefetch = 0 : i64, scratch_operands = 0 : i64, tpu.core_type = #tpu.core_type<tc>, window_params = [{transform_indices = @transform_0, window_bounds = array<i64: 1, 8, 32>}, {transform_indices = @transform_1, window_bounds = array<i64: 1, 8, 32>}, {transform_indices = @transform_2, window_bounds = array<i64: 1, 1, 8>}, {pipeline_mode = #tpu.pipeline_mode<synchronous>, transform_indices = @transform_3, window_bounds = array<i64: 32, 32>}, {pipeline_mode = #tpu.pipeline_mode<synchronous>, transform_indices = @transform_4, window_bounds = array<i64: 1, 32>}, {pipeline_mode = #tpu.pipeline_mode<synchronous>, transform_indices = @transform_5, window_bounds = array<i64: 32, 64>}, {pipeline_mode = #tpu.pipeline_mode<synchronous>, transform_indices = @transform_6, window_bounds = array<i64: 1, 64>}, {pipeline_mode = #tpu.pipeline_mode<synchronous>, transform_indices = @transform_7, window_bounds = array<i64: 32, 32>}, {pipeline_mode = #tpu.pipeline_mode<synchronous>, transform_indices = @transform_8, window_bounds = array<i64: 1, 32>}, {pipeline_mode = #tpu.pipeline_mode<synchronous>, transform_indices = @transform_9, window_bounds = array<i64: 32, 64>}, {pipeline_mode = #tpu.pipeline_mode<synchronous>, transform_indices = @transform_10, window_bounds = array<i64: 1, 64>}, {pipeline_mode = #tpu.pipeline_mode<synchronous>, transform_indices = @transform_11, window_bounds = array<i64: 64, 32>}, {pipeline_mode = #tpu.pipeline_mode<synchronous>, transform_indices = @transform_12, window_bounds = array<i64: 1, 32>}, {pipeline_mode = #tpu.pipeline_mode<synchronous>, transform_indices = @transform_13, window_bounds = array<i64: 1, 32>}, {pipeline_mode = #tpu.pipeline_mode<synchronous>, transform_indices = @transform_14, window_bounds = array<i64: 1, 32>}, {pipeline_mode = #tpu.pipeline_mode<synchronous>, transform_indices = @transform_15, window_bounds = array<i64: 1, 32>}, {pipeline_mode = #tpu.pipeline_mode<synchronous>, transform_indices = @transform_16, window_bounds = array<i64: 1, 32>}, {transform_indices = @transform_17, window_bounds = array<i64: 1, 8, 32>}]} {
    %c0 = arith.constant 0 : index
    %c0_0 = arith.constant 0 : index
    %c0_1 = arith.constant 0 : index
    %0 = vector.load %arg2[%c0, %c0_0, %c0_1] : memref<1x8x32xf32, #tpu.memory_space<vmem>>, vector<1x8x32xf32>
    %1 = vector.shape_cast %0 : vector<1x8x32xf32> to vector<8x32xf32>
    %c0_2 = arith.constant 0 : index
    %c0_3 = arith.constant 0 : index
    %c0_4 = arith.constant 0 : index
    %2 = vector.load %arg3[%c0_2, %c0_3, %c0_4] : memref<1x8x32xf32, #tpu.memory_space<vmem>>, vector<1x8x32xf32>
    %3 = vector.shape_cast %2 : vector<1x8x32xf32> to vector<8x32xf32>
    %c8_i32 = arith.constant 8 : i32
    %4 = arith.muli %arg1, %c8_i32 : i32
    %5 = tpu.iota {dimensions = array<i32: 0>} : vector<8x8xi32>
    %6 = vector.broadcast %4 : i32 to vector<8x8xi32>
    %7 = arith.addi %5, %6 : vector<8x8xi32>
    %8 = tpu.iota {dimensions = array<i32: 1>} : vector<8x8xi32>
    %9 = arith.cmpi sgt, %8, %7 : vector<8x8xi32>
    %cst = arith.constant -1.000000e+09 : f32
    %cst_5 = arith.constant 0.000000e+00 : f32
    %10 = vector.broadcast %cst : f32 to vector<8x8xf32>
    %11 = vector.broadcast %cst_5 : f32 to vector<8x8xf32>
    %12 = arith.select %9, %10, %11 : vector<8x8xi1>, vector<8x8xf32>
    %c0_6 = arith.constant 0 : index
    %c0_7 = arith.constant 0 : index
    %c0_8 = arith.constant 0 : index
    %13 = vector.load %arg4[%c0_6, %c0_7, %c0_8] : memref<1x1x8xf32, #tpu.memory_space<vmem>>, vector<1x1x8xf32>
    %14 = vector.shape_cast %13 : vector<1x1x8xf32> to vector<1x8xf32>
    %15 = vector.broadcast %14 : vector<1x8xf32> to vector<8x8xf32>
    %16 = arith.addf %12, %15 : vector<8x8xf32>
    %17 = arith.truncf %1 : vector<8x32xf32> to vector<8x32xbf16>
    %c0_9 = arith.constant 0 : index
    %c0_10 = arith.constant 0 : index
    %18 = vector.load %arg5[%c0_9, %c0_10] : memref<32x32xbf16, #tpu.memory_space<vmem>>, vector<32x32xbf16>
    %cst_11 = arith.constant dense<0.000000e+00> : vector<8x32xf32>
    %19 = tpu.matmul %17, %18, %cst_11 {dimension_numbers = #tpu.dot_dimension_numbers<[1], [0], [0], [1], [0, 0, 1, 1], [], []>} : vector<8x32xbf16>, vector<32x32xbf16>, vector<8x32xf32> -> vector<8x32xf32>
    %c0_12 = arith.constant 0 : index
    %c0_13 = arith.constant 0 : index
    %20 = vector.load %arg6[%c0_12, %c0_13] : memref<1x32xf32, #tpu.memory_space<vmem>>, vector<1x32xf32>
    %21 = vector.broadcast %20 : vector<1x32xf32> to vector<8x32xf32>
    %22 = arith.addf %19, %21 : vector<8x32xf32>
    %cst_14 = arith.constant 0.353553385 : f32
    %23 = vector.broadcast %cst_14 : f32 to vector<8x32xf32>
    %24 = arith.mulf %22, %23 : vector<8x32xf32>
    %25 = arith.truncf %24 : vector<8x32xf32> to vector<8x32xbf16>
    %26 = arith.truncf %3 : vector<8x32xf32> to vector<8x32xbf16>
    %c0_15 = arith.constant 0 : index
    %c0_16 = arith.constant 0 : index
    %27 = vector.load %arg7[%c0_15, %c0_16] : memref<32x64xbf16, #tpu.memory_space<vmem>>, vector<32x64xbf16>
    %cst_17 = arith.constant dense<0.000000e+00> : vector<8x64xf32>
    %28 = tpu.matmul %26, %27, %cst_17 {dimension_numbers = #tpu.dot_dimension_numbers<[1], [0], [0], [1], [0, 0, 1, 1], [], []>} : vector<8x32xbf16>, vector<32x64xbf16>, vector<8x64xf32> -> vector<8x64xf32>
    %c0_18 = arith.constant 0 : index
    %c0_19 = arith.constant 0 : index
    %29 = vector.load %arg8[%c0_18, %c0_19] : memref<1x64xf32, #tpu.memory_space<vmem>>, vector<1x64xf32>
    %30 = vector.broadcast %29 : vector<1x64xf32> to vector<8x64xf32>
    %31 = arith.addf %28, %30 : vector<8x64xf32>
    %32 = vector.extract_strided_slice %31 {offsets = [0, 0], sizes = [8, 32], strides = [1, 1]} : vector<8x64xf32> to vector<8x32xf32>
    %33 = arith.truncf %32 : vector<8x32xf32> to vector<8x32xbf16>
    %34 = vector.extract_strided_slice %31 {offsets = [0, 32], sizes = [8, 32], strides = [1, 1]} : vector<8x64xf32> to vector<8x32xf32>
    %35 = arith.truncf %34 : vector<8x32xf32> to vector<8x32xbf16>
    %36 = vector.extract_strided_slice %25 {offsets = [0, 0], sizes = [8, 8], strides = [1, 1]} : vector<8x32xbf16> to vector<8x8xbf16>
    %37 = vector.extract_strided_slice %33 {offsets = [0, 0], sizes = [8, 8], strides = [1, 1]} : vector<8x32xbf16> to vector<8x8xbf16>
    %cst_20 = arith.constant dense<0.000000e+00> : vector<8x8xf32>
    %38 = tpu.matmul %36, %37, %cst_20 {dimension_numbers = #tpu.dot_dimension_numbers<[1], [1], [0], [0], [0, 0, 1, 0], [], []>} : vector<8x8xbf16>, vector<8x8xbf16>, vector<8x8xf32> -> vector<8x8xf32>
    %39 = arith.addf %38, %16 : vector<8x8xf32>
    %cst_21 = arith.constant dense<0xFF800000> : vector<8xf32>
    %40 = vector.multi_reduction <maximumf>, %39, %cst_21 [1] : vector<8x8xf32> to vector<8xf32>
    %41 = vector.shape_cast %40 : vector<8xf32> to vector<8x1xf32>
    %42 = vector.broadcast %41 : vector<8x1xf32> to vector<8x8xf32>
    %43 = arith.subf %39, %42 : vector<8x8xf32>
    %44 = math.exp %43 : vector<8x8xf32>
    %cst_22 = arith.constant dense<0.000000e+00> : vector<8xf32>
    %45 = vector.multi_reduction <add>, %44, %cst_22 [1] : vector<8x8xf32> to vector<8xf32>
    %46 = vector.shape_cast %45 : vector<8xf32> to vector<8x1xf32>
    %47 = tpu.reciprocal %46 {approx = true} : vector<8x1xf32> -> vector<8x1xf32>
    %48 = vector.broadcast %47 : vector<8x1xf32> to vector<8x8xf32>
    %49 = arith.mulf %44, %48 : vector<8x8xf32>
    %50 = arith.truncf %49 : vector<8x8xf32> to vector<8x8xbf16>
    %51 = vector.extract_strided_slice %35 {offsets = [0, 0], sizes = [8, 8], strides = [1, 1]} : vector<8x32xbf16> to vector<8x8xbf16>
    %cst_23 = arith.constant dense<0.000000e+00> : vector<8x8xf32>
    %52 = tpu.matmul %50, %51, %cst_23 {dimension_numbers = #tpu.dot_dimension_numbers<[1], [0], [0], [1], [0, 0, 1, 1], [], []>} : vector<8x8xbf16>, vector<8x8xbf16>, vector<8x8xf32> -> vector<8x8xf32>
    %53 = vector.extract_strided_slice %25 {offsets = [0, 8], sizes = [8, 8], strides = [1, 1]} : vector<8x32xbf16> to vector<8x8xbf16>
    %54 = vector.extract_strided_slice %33 {offsets = [0, 8], sizes = [8, 8], strides = [1, 1]} : vector<8x32xbf16> to vector<8x8xbf16>
    %cst_24 = arith.constant dense<0.000000e+00> : vector<8x8xf32>
    %55 = tpu.matmul %53, %54, %cst_24 {dimension_numbers = #tpu.dot_dimension_numbers<[1], [1], [0], [0], [0, 0, 1, 0], [], []>} : vector<8x8xbf16>, vector<8x8xbf16>, vector<8x8xf32> -> vector<8x8xf32>
    %56 = arith.addf %55, %16 : vector<8x8xf32>
    %cst_25 = arith.constant dense<0xFF800000> : vector<8xf32>
    %57 = vector.multi_reduction <maximumf>, %56, %cst_25 [1] : vector<8x8xf32> to vector<8xf32>
    %58 = vector.shape_cast %57 : vector<8xf32> to vector<8x1xf32>
    %59 = vector.broadcast %58 : vector<8x1xf32> to vector<8x8xf32>
    %60 = arith.subf %56, %59 : vector<8x8xf32>
    %61 = math.exp %60 : vector<8x8xf32>
    %cst_26 = arith.constant dense<0.000000e+00> : vector<8xf32>
    %62 = vector.multi_reduction <add>, %61, %cst_26 [1] : vector<8x8xf32> to vector<8xf32>
    %63 = vector.shape_cast %62 : vector<8xf32> to vector<8x1xf32>
    %64 = tpu.reciprocal %63 {approx = true} : vector<8x1xf32> -> vector<8x1xf32>
    %65 = vector.broadcast %64 : vector<8x1xf32> to vector<8x8xf32>
    %66 = arith.mulf %61, %65 : vector<8x8xf32>
    %67 = arith.truncf %66 : vector<8x8xf32> to vector<8x8xbf16>
    %68 = vector.extract_strided_slice %35 {offsets = [0, 8], sizes = [8, 8], strides = [1, 1]} : vector<8x32xbf16> to vector<8x8xbf16>
    %cst_27 = arith.constant dense<0.000000e+00> : vector<8x8xf32>
    %69 = tpu.matmul %67, %68, %cst_27 {dimension_numbers = #tpu.dot_dimension_numbers<[1], [0], [0], [1], [0, 0, 1, 1], [], []>} : vector<8x8xbf16>, vector<8x8xbf16>, vector<8x8xf32> -> vector<8x8xf32>
    %70 = vector.extract_strided_slice %25 {offsets = [0, 16], sizes = [8, 8], strides = [1, 1]} : vector<8x32xbf16> to vector<8x8xbf16>
    %71 = vector.extract_strided_slice %33 {offsets = [0, 16], sizes = [8, 8], strides = [1, 1]} : vector<8x32xbf16> to vector<8x8xbf16>
    %cst_28 = arith.constant dense<0.000000e+00> : vector<8x8xf32>
    %72 = tpu.matmul %70, %71, %cst_28 {dimension_numbers = #tpu.dot_dimension_numbers<[1], [1], [0], [0], [0, 0, 1, 0], [], []>} : vector<8x8xbf16>, vector<8x8xbf16>, vector<8x8xf32> -> vector<8x8xf32>
    %73 = arith.addf %72, %16 : vector<8x8xf32>
    %cst_29 = arith.constant dense<0xFF800000> : vector<8xf32>
    %74 = vector.multi_reduction <maximumf>, %73, %cst_29 [1] : vector<8x8xf32> to vector<8xf32>
    %75 = vector.shape_cast %74 : vector<8xf32> to vector<8x1xf32>
    %76 = vector.broadcast %75 : vector<8x1xf32> to vector<8x8xf32>
    %77 = arith.subf %73, %76 : vector<8x8xf32>
    %78 = math.exp %77 : vector<8x8xf32>
    %cst_30 = arith.constant dense<0.000000e+00> : vector<8xf32>
    %79 = vector.multi_reduction <add>, %78, %cst_30 [1] : vector<8x8xf32> to vector<8xf32>
    %80 = vector.shape_cast %79 : vector<8xf32> to vector<8x1xf32>
    %81 = tpu.reciprocal %80 {approx = true} : vector<8x1xf32> -> vector<8x1xf32>
    %82 = vector.broadcast %81 : vector<8x1xf32> to vector<8x8xf32>
    %83 = arith.mulf %78, %82 : vector<8x8xf32>
    %84 = arith.truncf %83 : vector<8x8xf32> to vector<8x8xbf16>
    %85 = vector.extract_strided_slice %35 {offsets = [0, 16], sizes = [8, 8], strides = [1, 1]} : vector<8x32xbf16> to vector<8x8xbf16>
    %cst_31 = arith.constant dense<0.000000e+00> : vector<8x8xf32>
    %86 = tpu.matmul %84, %85, %cst_31 {dimension_numbers = #tpu.dot_dimension_numbers<[1], [0], [0], [1], [0, 0, 1, 1], [], []>} : vector<8x8xbf16>, vector<8x8xbf16>, vector<8x8xf32> -> vector<8x8xf32>
    %87 = vector.extract_strided_slice %25 {offsets = [0, 24], sizes = [8, 8], strides = [1, 1]} : vector<8x32xbf16> to vector<8x8xbf16>
    %88 = vector.extract_strided_slice %33 {offsets = [0, 24], sizes = [8, 8], strides = [1, 1]} : vector<8x32xbf16> to vector<8x8xbf16>
    %cst_32 = arith.constant dense<0.000000e+00> : vector<8x8xf32>
    %89 = tpu.matmul %87, %88, %cst_32 {dimension_numbers = #tpu.dot_dimension_numbers<[1], [1], [0], [0], [0, 0, 1, 0], [], []>} : vector<8x8xbf16>, vector<8x8xbf16>, vector<8x8xf32> -> vector<8x8xf32>
    %90 = arith.addf %89, %16 : vector<8x8xf32>
    %cst_33 = arith.constant dense<0xFF800000> : vector<8xf32>
    %91 = vector.multi_reduction <maximumf>, %90, %cst_33 [1] : vector<8x8xf32> to vector<8xf32>
    %92 = vector.shape_cast %91 : vector<8xf32> to vector<8x1xf32>
    %93 = vector.broadcast %92 : vector<8x1xf32> to vector<8x8xf32>
    %94 = arith.subf %90, %93 : vector<8x8xf32>
    %95 = math.exp %94 : vector<8x8xf32>
    %cst_34 = arith.constant dense<0.000000e+00> : vector<8xf32>
    %96 = vector.multi_reduction <add>, %95, %cst_34 [1] : vector<8x8xf32> to vector<8xf32>
    %97 = vector.shape_cast %96 : vector<8xf32> to vector<8x1xf32>
    %98 = tpu.reciprocal %97 {approx = true} : vector<8x1xf32> -> vector<8x1xf32>
    %99 = vector.broadcast %98 : vector<8x1xf32> to vector<8x8xf32>
    %100 = arith.mulf %95, %99 : vector<8x8xf32>
    %101 = arith.truncf %100 : vector<8x8xf32> to vector<8x8xbf16>
    %102 = vector.extract_strided_slice %35 {offsets = [0, 24], sizes = [8, 8], strides = [1, 1]} : vector<8x32xbf16> to vector<8x8xbf16>
    %cst_35 = arith.constant dense<0.000000e+00> : vector<8x8xf32>
    %103 = tpu.matmul %101, %102, %cst_35 {dimension_numbers = #tpu.dot_dimension_numbers<[1], [0], [0], [1], [0, 0, 1, 1], [], []>} : vector<8x8xbf16>, vector<8x8xbf16>, vector<8x8xf32> -> vector<8x8xf32>
    %104 = tpu.concatenate %52, %69, %86, %103 in 1 : vector<8x8xf32>, vector<8x8xf32>, vector<8x8xf32>, vector<8x8xf32> -> vector<8x32xf32>
    %105 = arith.truncf %104 : vector<8x32xf32> to vector<8x32xbf16>
    %c0_36 = arith.constant 0 : index
    %c0_37 = arith.constant 0 : index
    %106 = vector.load %arg9[%c0_36, %c0_37] : memref<32x32xbf16, #tpu.memory_space<vmem>>, vector<32x32xbf16>
    %cst_38 = arith.constant dense<0.000000e+00> : vector<8x32xf32>
    %107 = tpu.matmul %105, %106, %cst_38 {dimension_numbers = #tpu.dot_dimension_numbers<[1], [0], [0], [1], [0, 0, 1, 1], [], []>} : vector<8x32xbf16>, vector<32x32xbf16>, vector<8x32xf32> -> vector<8x32xf32>
    %c0_39 = arith.constant 0 : index
    %c0_40 = arith.constant 0 : index
    %108 = vector.load %arg10[%c0_39, %c0_40] : memref<1x32xf32, #tpu.memory_space<vmem>>, vector<1x32xf32>
    %109 = vector.broadcast %108 : vector<1x32xf32> to vector<8x32xf32>
    %110 = arith.addf %107, %109 : vector<8x32xf32>
    %111 = arith.addf %1, %110 : vector<8x32xf32>
    %cst_41 = arith.constant dense<0.000000e+00> : vector<8xf32>
    %112 = vector.multi_reduction <add>, %111, %cst_41 [1] : vector<8x32xf32> to vector<8xf32>
    %113 = vector.shape_cast %112 : vector<8xf32> to vector<8x1xf32>
    %cst_42 = arith.constant 3.200000e+01 : f32
    %114 = vector.broadcast %cst_42 : f32 to vector<8x1xf32>
    %115 = arith.divf %113, %114 : vector<8x1xf32>
    %116 = vector.broadcast %115 : vector<8x1xf32> to vector<8x32xf32>
    %117 = arith.subf %111, %116 : vector<8x32xf32>
    %118 = arith.mulf %117, %117 : vector<8x32xf32>
    %cst_43 = arith.constant dense<0.000000e+00> : vector<8xf32>
    %119 = vector.multi_reduction <add>, %118, %cst_43 [1] : vector<8x32xf32> to vector<8xf32>
    %120 = vector.shape_cast %119 : vector<8xf32> to vector<8x1xf32>
    %cst_44 = arith.constant 3.200000e+01 : f32
    %121 = vector.broadcast %cst_44 : f32 to vector<8x1xf32>
    %122 = arith.divf %120, %121 : vector<8x1xf32>
    %cst_45 = arith.constant 9.99999974E-6 : f32
    %123 = vector.broadcast %cst_45 : f32 to vector<8x1xf32>
    %124 = arith.addf %122, %123 : vector<8x1xf32>
    %125 = math.rsqrt %124 : vector<8x1xf32>
    %126 = vector.broadcast %125 : vector<8x1xf32> to vector<8x32xf32>
    %127 = arith.mulf %117, %126 : vector<8x32xf32>
    %c0_46 = arith.constant 0 : index
    %c0_47 = arith.constant 0 : index
    %128 = vector.load %arg15[%c0_46, %c0_47] : memref<1x32xf32, #tpu.memory_space<vmem>>, vector<1x32xf32>
    %129 = vector.broadcast %128 : vector<1x32xf32> to vector<8x32xf32>
    %130 = arith.mulf %127, %129 : vector<8x32xf32>
    %c0_48 = arith.constant 0 : index
    %c0_49 = arith.constant 0 : index
    %131 = vector.load %arg16[%c0_48, %c0_49] : memref<1x32xf32, #tpu.memory_space<vmem>>, vector<1x32xf32>
    %132 = vector.broadcast %131 : vector<1x32xf32> to vector<8x32xf32>
    %133 = arith.addf %130, %132 : vector<8x32xf32>
    %134 = arith.truncf %133 : vector<8x32xf32> to vector<8x32xbf16>
    %c0_50 = arith.constant 0 : index
    %c0_51 = arith.constant 0 : index
    %135 = vector.load %arg11[%c0_50, %c0_51] : memref<32x64xbf16, #tpu.memory_space<vmem>>, vector<32x64xbf16>
    %cst_52 = arith.constant dense<0.000000e+00> : vector<8x64xf32>
    %136 = tpu.matmul %134, %135, %cst_52 {dimension_numbers = #tpu.dot_dimension_numbers<[1], [0], [0], [1], [0, 0, 1, 1], [], []>} : vector<8x32xbf16>, vector<32x64xbf16>, vector<8x64xf32> -> vector<8x64xf32>
    %c0_53 = arith.constant 0 : index
    %c0_54 = arith.constant 0 : index
    %137 = vector.load %arg12[%c0_53, %c0_54] : memref<1x64xf32, #tpu.memory_space<vmem>>, vector<1x64xf32>
    %138 = vector.broadcast %137 : vector<1x64xf32> to vector<8x64xf32>
    %139 = arith.addf %136, %138 : vector<8x64xf32>
    %cst_55 = arith.constant 0.000000e+00 : f32
    %140 = vector.broadcast %cst_55 : f32 to vector<8x64xf32>
    %141 = arith.maximumf %139, %140 : vector<8x64xf32>
    %142 = arith.truncf %141 : vector<8x64xf32> to vector<8x64xbf16>
    %c0_56 = arith.constant 0 : index
    %c0_57 = arith.constant 0 : index
    %143 = vector.load %arg13[%c0_56, %c0_57] : memref<64x32xbf16, #tpu.memory_space<vmem>>, vector<64x32xbf16>
    %cst_58 = arith.constant dense<0.000000e+00> : vector<8x32xf32>
    %144 = tpu.matmul %142, %143, %cst_58 {dimension_numbers = #tpu.dot_dimension_numbers<[1], [0], [0], [1], [0, 0, 1, 1], [], []>} : vector<8x64xbf16>, vector<64x32xbf16>, vector<8x32xf32> -> vector<8x32xf32>
    %c0_59 = arith.constant 0 : index
    %c0_60 = arith.constant 0 : index
    %145 = vector.load %arg14[%c0_59, %c0_60] : memref<1x32xf32, #tpu.memory_space<vmem>>, vector<1x32xf32>
    %146 = vector.broadcast %145 : vector<1x32xf32> to vector<8x32xf32>
    %147 = arith.addf %144, %146 : vector<8x32xf32>
    %148 = arith.addf %133, %147 : vector<8x32xf32>
    %cst_61 = arith.constant dense<0.000000e+00> : vector<8xf32>
    %149 = vector.multi_reduction <add>, %148, %cst_61 [1] : vector<8x32xf32> to vector<8xf32>
    %150 = vector.shape_cast %149 : vector<8xf32> to vector<8x1xf32>
    %cst_62 = arith.constant 3.200000e+01 : f32
    %151 = vector.broadcast %cst_62 : f32 to vector<8x1xf32>
    %152 = arith.divf %150, %151 : vector<8x1xf32>
    %153 = vector.broadcast %152 : vector<8x1xf32> to vector<8x32xf32>
    %154 = arith.subf %148, %153 : vector<8x32xf32>
    %155 = arith.mulf %154, %154 : vector<8x32xf32>
    %cst_63 = arith.constant dense<0.000000e+00> : vector<8xf32>
    %156 = vector.multi_reduction <add>, %155, %cst_63 [1] : vector<8x32xf32> to vector<8xf32>
    %157 = vector.shape_cast %156 : vector<8xf32> to vector<8x1xf32>
    %cst_64 = arith.constant 3.200000e+01 : f32
    %158 = vector.broadcast %cst_64 : f32 to vector<8x1xf32>
    %159 = arith.divf %157, %158 : vector<8x1xf32>
    %cst_65 = arith.constant 9.99999974E-6 : f32
    %160 = vector.broadcast %cst_65 : f32 to vector<8x1xf32>
    %161 = arith.addf %159, %160 : vector<8x1xf32>
    %162 = math.rsqrt %161 : vector<8x1xf32>
    %163 = vector.broadcast %162 : vector<8x1xf32> to vector<8x32xf32>
    %164 = arith.mulf %154, %163 : vector<8x32xf32>
    %c0_66 = arith.constant 0 : index
    %c0_67 = arith.constant 0 : index
    %165 = vector.load %arg17[%c0_66, %c0_67] : memref<1x32xf32, #tpu.memory_space<vmem>>, vector<1x32xf32>
    %166 = vector.broadcast %165 : vector<1x32xf32> to vector<8x32xf32>
    %167 = arith.mulf %164, %166 : vector<8x32xf32>
    %c0_68 = arith.constant 0 : index
    %c0_69 = arith.constant 0 : index
    %168 = vector.load %arg18[%c0_68, %c0_69] : memref<1x32xf32, #tpu.memory_space<vmem>>, vector<1x32xf32>
    %169 = vector.broadcast %168 : vector<1x32xf32> to vector<8x32xf32>
    %170 = arith.addf %167, %169 : vector<8x32xf32>
    %c0_70 = arith.constant 0 : index
    %c0_71 = arith.constant 0 : index
    %c0_72 = arith.constant 0 : index
    %171 = vector.load %arg19[%c0_70, %c0_71, %c0_72] : memref<1x8x32xf32, #tpu.memory_space<vmem>>, vector<1x8x32xf32>
    %172 = vector.shape_cast %171 : vector<1x8x32xf32> to vector<8x32xf32>
    %173 = vector.shape_cast %170 : vector<8x32xf32> to vector<1x8x32xf32>
    tpu.vector_store %arg19[%c0_70, %c0_71, %c0_72], %173 {strides = array<i32>} : memref<1x8x32xf32, #tpu.memory_space<vmem>>, vector<1x8x32xf32>,
    return
  }
  func.func @transform_0(%arg0: i32, %arg1: i32) -> (i32, i32, i32) {
    %c0_i32 = arith.constant 0 : i32
    %c0_i32_0 = arith.constant 0 : i32
    return %arg0, %arg1, %c0_i32 : i32, i32, i32
  }
  func.func @transform_1(%arg0: i32, %arg1: i32) -> (i32, i32, i32) {
    %c0_i32 = arith.constant 0 : i32
    %c0_i32_0 = arith.constant 0 : i32
    %c0_i32_1 = arith.constant 0 : i32
    return %arg0, %c0_i32, %c0_i32_0 : i32, i32, i32
  }
  func.func @transform_2(%arg0: i32, %arg1: i32) -> (i32, i32, i32) {
    %c0_i32 = arith.constant 0 : i32
    %c0_i32_0 = arith.constant 0 : i32
    %c0_i32_1 = arith.constant 0 : i32
    return %arg0, %c0_i32, %c0_i32_0 : i32, i32, i32
  }
  func.func @transform_3(%arg0: i32, %arg1: i32) -> (i32, i32) {
    %c0_i32 = arith.constant 0 : i32
    %c0_i32_0 = arith.constant 0 : i32
    %c0_i32_1 = arith.constant 0 : i32
    return %c0_i32, %c0_i32_0 : i32, i32
  }
  func.func @transform_4(%arg0: i32, %arg1: i32) -> (i32, i32) {
    %c0_i32 = arith.constant 0 : i32
    %c0_i32_0 = arith.constant 0 : i32
    %c0_i32_1 = arith.constant 0 : i32
    return %c0_i32, %c0_i32_0 : i32, i32
  }
  func.func @transform_5(%arg0: i32, %arg1: i32) -> (i32, i32) {
    %c0_i32 = arith.constant 0 : i32
    %c0_i32_0 = arith.constant 0 : i32
    %c0_i32_1 = arith.constant 0 : i32
    return %c0_i32, %c0_i32_0 : i32, i32
  }
  func.func @transform_6(%arg0: i32, %arg1: i32) -> (i32, i32) {
    %c0_i32 = arith.constant 0 : i32
    %c0_i32_0 = arith.constant 0 : i32
    %c0_i32_1 = arith.constant 0 : i32
    return %c0_i32, %c0_i32_0 : i32, i32
  }
  func.func @transform_7(%arg0: i32, %arg1: i32) -> (i32, i32) {
    %c0_i32 = arith.constant 0 : i32
    %c0_i32_0 = arith.constant 0 : i32
    %c0_i32_1 = arith.constant 0 : i32
    return %c0_i32, %c0_i32_0 : i32, i32
  }
  func.func @transform_8(%arg0: i32, %arg1: i32) -> (i32, i32) {
    %c0_i32 = arith.constant 0 : i32
    %c0_i32_0 = arith.constant 0 : i32
    %c0_i32_1 = arith.constant 0 : i32
    return %c0_i32, %c0_i32_0 : i32, i32
  }
  func.func @transform_9(%arg0: i32, %arg1: i32) -> (i32, i32) {
    %c0_i32 = arith.constant 0 : i32
    %c0_i32_0 = arith.constant 0 : i32
    %c0_i32_1 = arith.constant 0 : i32
    return %c0_i32, %c0_i32_0 : i32, i32
  }
  func.func @transform_10(%arg0: i32, %arg1: i32) -> (i32, i32) {
    %c0_i32 = arith.constant 0 : i32
    %c0_i32_0 = arith.constant 0 : i32
    %c0_i32_1 = arith.constant 0 : i32
    return %c0_i32, %c0_i32_0 : i32, i32
  }
  func.func @transform_11(%arg0: i32, %arg1: i32) -> (i32, i32) {
    %c0_i32 = arith.constant 0 : i32
    %c0_i32_0 = arith.constant 0 : i32
    %c0_i32_1 = arith.constant 0 : i32
    return %c0_i32, %c0_i32_0 : i32, i32
  }
  func.func @transform_12(%arg0: i32, %arg1: i32) -> (i32, i32) {
    %c0_i32 = arith.constant 0 : i32
    %c0_i32_0 = arith.constant 0 : i32
    %c0_i32_1 = arith.constant 0 : i32
    return %c0_i32, %c0_i32_0 : i32, i32
  }
  func.func @transform_13(%arg0: i32, %arg1: i32) -> (i32, i32) {
    %c0_i32 = arith.constant 0 : i32
    %c0_i32_0 = arith.constant 0 : i32
    %c0_i32_1 = arith.constant 0 : i32
    return %c0_i32, %c0_i32_0 : i32, i32
  }
  func.func @transform_14(%arg0: i32, %arg1: i32) -> (i32, i32) {
    %c0_i32 = arith.constant 0 : i32
    %c0_i32_0 = arith.constant 0 : i32
    %c0_i32_1 = arith.constant 0 : i32
    return %c0_i32, %c0_i32_0 : i32, i32
  }
  func.func @transform_15(%arg0: i32, %arg1: i32) -> (i32, i32) {
    %c0_i32 = arith.constant 0 : i32
    %c0_i32_0 = arith.constant 0 : i32
    %c0_i32_1 = arith.constant 0 : i32
    return %c0_i32, %c0_i32_0 : i32, i32
  }
  func.func @transform_16(%arg0: i32, %arg1: i32) -> (i32, i32) {
    %c0_i32 = arith.constant 0 : i32
    %c0_i32_0 = arith.constant 0 : i32
    %c0_i32_1 = arith.constant 0 : i32
    return %c0_i32, %c0_i32_0 : i32, i32
  }
  func.func @transform_17(%arg0: i32, %arg1: i32) -> (i32, i32, i32) {
    %c0_i32 = arith.constant 0 : i32
    %c0_i32_0 = arith.constant 0 : i32
    return %arg0, %arg1, %c0_i32 : i32, i32, i32
  }
}

module attributes {stable_mosaic.version = 11 : i64} {
  func.func @_linear_kernel(%arg0: i32, %arg1: i32, %arg2: memref<16x32xf32, #tpu.memory_space<vmem>>, %arg3: memref<32x16xbf16, #tpu.memory_space<vmem>>, %arg4: memref<1x16xf32, #tpu.memory_space<vmem>>, %arg5: memref<16x16xf32, #tpu.memory_space<vmem>>) attributes {dimension_semantics = [#tpu.dimension_semantics<parallel>, #tpu.dimension_semantics<parallel>], iteration_bounds = array<i64: 1, 1>, scalar_prefetch = 0 : i64, scratch_operands = 0 : i64, tpu.core_type = #tpu.core_type<tc>, window_params = [{transform_indices = @transform_0, window_bounds = array<i64: 16, 32>}, {transform_indices = @transform_1, window_bounds = array<i64: 32, 16>}, {transform_indices = @transform_2, window_bounds = array<i64: 1, 16>}, {transform_indices = @transform_3, window_bounds = array<i64: 16, 16>}]} {
    %c0 = arith.constant 0 : index
    %c0_0 = arith.constant 0 : index
    %0 = vector.load %arg2[%c0, %c0_0] : memref<16x32xf32, #tpu.memory_space<vmem>>, vector<16x32xf32>
    %1 = arith.truncf %0 : vector<16x32xf32> to vector<16x32xbf16>
    %c0_1 = arith.constant 0 : index
    %c0_2 = arith.constant 0 : index
    %2 = vector.load %arg3[%c0_1, %c0_2] : memref<32x16xbf16, #tpu.memory_space<vmem>>, vector<32x16xbf16>
    %cst = arith.constant dense<0.000000e+00> : vector<16x16xf32>
    %3 = tpu.matmul %1, %2, %cst {dimension_numbers = #tpu.dot_dimension_numbers<[1], [0], [0], [1], [0, 0, 1, 1], [], []>} : vector<16x32xbf16>, vector<32x16xbf16>, vector<16x16xf32> -> vector<16x16xf32>
    %c0_3 = arith.constant 0 : index
    %c0_4 = arith.constant 0 : index
    %4 = vector.load %arg4[%c0_3, %c0_4] : memref<1x16xf32, #tpu.memory_space<vmem>>, vector<1x16xf32>
    %5 = vector.broadcast %4 : vector<1x16xf32> to vector<16x16xf32>
    %6 = arith.addf %3, %5 : vector<16x16xf32>
    %c0_5 = arith.constant 0 : index
    %c0_6 = arith.constant 0 : index
    %7 = vector.load %arg5[%c0_5, %c0_6] : memref<16x16xf32, #tpu.memory_space<vmem>>, vector<16x16xf32>
    tpu.vector_store %arg5[%c0_5, %c0_6], %6 {strides = array<i32>} : memref<16x16xf32, #tpu.memory_space<vmem>>, vector<16x16xf32>,
    return
  }
  func.func @transform_0(%arg0: i32, %arg1: i32) -> (i32, i32) {
    %c0_i32 = arith.constant 0 : i32
    %c0_i32_0 = arith.constant 0 : i32
    return %arg0, %c0_i32 : i32, i32
  }
  func.func @transform_1(%arg0: i32, %arg1: i32) -> (i32, i32) {
    %c0_i32 = arith.constant 0 : i32
    %c0_i32_0 = arith.constant 0 : i32
    return %c0_i32, %arg1 : i32, i32
  }
  func.func @transform_2(%arg0: i32, %arg1: i32) -> (i32, i32) {
    %c0_i32 = arith.constant 0 : i32
    %c0_i32_0 = arith.constant 0 : i32
    return %c0_i32, %arg1 : i32, i32
  }
  func.func @transform_3(%arg0: i32, %arg1: i32) -> (i32, i32) {
    %c0_i32 = arith.constant 0 : i32
    return %arg0, %arg1 : i32, i32
  }
}

</mosaic_0001>

<bundles_post_ra>
// kernel: encoder_only_transformer.5
= control target key start
LH: loop header
LB: loop body
LE: loop exit
PB: predicated region body
PF: predicated region fallthrough
CT: control target
= control target key end

     0   :  { %v152_v1 = vmov 0.0   ;;  %vm153_vm0 = vmmov 0   ;;  %s204_s0 = inlined_call_operand.vmem [shape: f32[16,32], index: 0, kind: input, shape index: {}]   ;;  %s205_s1 = inlined_call_operand.vmem [shape: bf16[32,16], index: 1, kind: input, shape index: {}]   ;;  %s206_s2 = inlined_call_operand.vmem [shape: f32[1,16], index: 2, kind: input, shape index: {}]   ;;  %s207_s3 = inlined_call_operand.hbm [shape: f32[16,16], index: 3, kind: output, shape index: {}]  }
   0x1   :  { %v126_v0 = vld [vmem:[%s205_s1] sm:$0xff]   ;;  %113 = vmatprep.subr.bf16.mxu0 %v152_v1  ;;  %v127_v2 = vld [vmem:[%s205_s1 + $0x8] sm:$0xff]   ;;  %117 = vmatprep.mubr.msk.bf16.mxu0 %vm153_vm0, %v152_v1 }
   0x2   :  { %114 = vmatpush3.bf16.msra.mxu0 %v126_v0  ;;  %v16_v3 = vld [vmem:[%s204_s0] sm:$0xff]  ;;  %v17_v4 = vld [vmem:[%s204_s0 + $0x8] sm:$0xff] }
   0x3   :  { %115 = vmatprep.subr.bf16.mxu0 %v152_v1 }
   0x4   :  { %8 = vsyncpa [#allocation3], 0  ;;  %v18_v5 = vpack.c.bf16 %v17_v4, %v16_v3  ;;  %vm42_vm1 = vcmask 261120   ;;  %v106_v6 = vld [vmem:[%s206_s2] ss:$0 sm:$0xff]  ;;  %s154_s1 = smov [#allocation2]  }
   0x5   :  { %s95_s22 = sshll.u32 %s154_s1, 4  ;;  %vm87_vm2 = vcmask 130048   ;;  %s96_s22 = int_to_ptr.vmem [resolvable:$true] %s95_s22 }
   0x6   :  { %116 = vmatpush3.bf16.msra.mxu0 %v127_v2  ;;  %s128_s0 = scalar_lea.vmem %s96_s22, 256  ;;  %p133_p1 = scmp.lt.s32.totalorder %s96_s22, %s96_s22 }
   0x7   :  { %p129_p0 = scmp.ne.s32.totalorder %s96_s22, %s128_s0  ;;  %p134_p2 = scmp.lt.s32.totalorder %s128_s0, %s128_s0 }
   0x9   :  { %118 = vmatmul.mubr.msk.bf16.vlgmr.msra.gmra.mrb[0].mxu0 %vm42_vm1, %v18_v5  ;;  %p135_p3 = por %p134_p2, %p133_p1 }
   0xb   :  { %p136_p4 = pnand %p135_p3, %p129_p0 }
  0xdc   :  { %v80_v7 = vpop.f32.mrb[0].mxu0 }
  0xdd   :  { %v81_v8 = vadd.f32 %v106_v6, %v80_v7  ;;  %v119_v9 = vpop.f32.mrb[1].mxu0 }
  0xde   :  { %v83_v10 = vpop.f32.mrb[2].mxu0 }
  0xdf   :  { %88 = vst.msk [vmem:[#allocation2] sm:$0xff] %vm87_vm2, %v81_v8  ;;  %v84_v11 = vadd.f32 %v106_v6, %v83_v10  ;;  %v120_v12 = vpop.f32.mrb[3].mxu0 }
  0xe1   :  { %89 = vst.msk [vmem:[#allocation2 + $0x8] sm:$0xff] %vm87_vm2, %v84_v11 }
  0xe2   :  { %139 = shalt.err (!%p136_p4)
}
  0xe3   :  { %s140_s24 = scalar_lea.hbm %s207_s3, 256 }
  0xe4   :  { %p141_p5 = scmp.ne.s32.totalorder %s207_s3, %s140_s24  ;;  %p144_p6 = scmp.lt.u32.totalorder %s140_s24, %s207_s3 }
  0xe6   :  { %p146_p7 = pnand %p144_p6, %p141_p5 }
  0xe8   :  { %149 = shalt.err (!%p146_p7)
}
  0xe9   :  { %s155_s29 = smov 128   ;;  %s156_s30 = smov 8  }
  0xea   :  { %101 = dma.vmem_to_hbm [thread:$0]  %s96_s22, 256, %s207_s3, [#allocation3], %s155_s29, %s155_s29, %s156_s30  }
  0xeb   :  { %150 = dma.done.wait [#allocation3], 256  }
  0xec   :  { %151 = vsyncadd [#allocation3], 4294967040 }
  0xed   :  { %105 = vsyncpa [#allocation3], 1 }

// kernel: encoder_only_transformer.3
= control target key start
LH: loop header
LB: loop body
LE: loop exit
PB: predicated region body
PF: predicated region fallthrough
CT: control target
= control target key end

     0   :  { %s1961_s24 = smov 0   ;;  %s1963_s25 = smov 0   ;;  %s2168_s0 = inlined_call_operand.vmem [shape: f32[2,8,32], index: 0, kind: input, shape index: {}, may-alias: {0,1}]   ;;  %s2169_s1 = inlined_call_operand.vmem [shape: f32[2,8,32], index: 1, kind: input, shape index: {}, may-alias: {0,1}]   ;;  %s2170_s2 = inlined_call_operand.vmem [shape: f32[2,1,8], index: 2, kind: input, shape index: {}]   ;;  %s2171_s3 = inlined_call_operand.vmem [shape: bf16[32,32], index: 3, kind: input, shape index: {}]   ;;  %s2172_s4 = inlined_call_operand.vmem [shape: f32[1,32], index: 4, kind: input, shape index: {}]   ;;  %s2173_s5 = inlined_call_operand.vmem [shape: bf16[32,64], index: 5, kind: input, shape index: {}]   ;;  %s2174_s6 = inlined_call_operand.vmem [shape: f32[1,64], index: 6, kind: input, shape index: {}]   ;;  %s2175_s7 = inlined_call_operand.vmem [shape: bf16[32,32], index: 7, kind: input, shape index: {}]   ;;  %s2176_s8 = inlined_call_operand.vmem [shape: f32[1,32], index: 8, kind: input, shape index: {}]   ;;  %s2177_s9 = inlined_call_operand.vmem [shape: bf16[32,64], index: 9, kind: input, shape index: {}]   ;;  %s2178_s10 = inlined_call_operand.vmem [shape: f32[1,64], index: 10, kind: input, shape index: {}]   ;;  %s2179_s11 = inlined_call_operand.vmem [shape: bf16[64,32], index: 11, kind: input, shape index: {}]   ;;  %s2180_s12 = inlined_call_operand.vmem [shape: f32[1,32], index: 12, kind: input, shape index: {}]   ;;  %s2181_s13 = inlined_call_operand.vmem [shape: f32[1,32], index: 13, kind: input, shape index: {}]   ;;  %s2182_s14 = inlined_call_operand.vmem [shape: f32[1,32], index: 14, kind: input, shape index: {}]   ;;  %s2183_s15 = inlined_call_operand.vmem [shape: f32[1,32], index: 15, kind: input, shape index: {}]   ;;  %s2184_s16 = inlined_call_operand.vmem [shape: f32[1,32], index: 16, kind: input, shape index: {}]   ;;  %s2185_s17 = inlined_call_operand.vmem [shape: f32[2,8,32], index: 17, kind: output, shape index: {}]  }
   0x1   :  { %2186 = sst [smem:[#allocation2_spill]] %s2168_s0  ;;  %s1965_s26 = smov 0  }
   0x2   :  { %2187 = sst [smem:[#allocation3_spill]] %s2169_s1 }
   0x3 LB: > { %s39_s27 = sadd.s32 1, %s1853_s25  ;;  %p1601_p0 = scmp.ge.s32.totalorder %s1857_s26, 1  ;;  %s1857_s26 = sphi %s1965_s26, %s27_s26   ;;  %s1853_s25 = sphi %s1963_s25, %s2191_s25   ;;  %s1849_s24 = sphi %s1961_s24, %s2190_s24  }
   0x4   : > { %p41_p1 = scmp.ge.s32.totalorder %s39_s27, 2  ;;  %p522_p2 = scmp.lt.s32.totalorder %s1857_s26, 3 }
   0x6   : > { %s2193_s27 = smov (%p41_p1, %s39_s27), 0  ;;  %p523_p3 = pnand %p1601_p0, %p522_p2 }
   0x7   : > { %v1803_v0 = vld [vmem:[%s2171_s3] sm:$0xff] (!%p523_p3)   ;;  %v1859_v1 = vmov (!%p523_p3), 0.0   ;;  %v1804_v2 = vld [vmem:[%s2171_s3 + $0x8] sm:$0xff] (!%p523_p3)   ;;  %vm1860_vm0 = vmmov (!%p523_p3), 0   ;;  %p585_p4 = scmp.lt.s32.totalorder (!%p523_p3), %s1849_s24, 1  ;;  %s2188_s22 = sld [smem:[#allocation2_spill]] (!%p523_p3)  ;;  %v610_v34 = vlaneseq (!%p523_p3) }
   0x8   : > { %526 = sbr.rel (%p523_p3) target bundleno = 2532 (0x9e4), region = 88  ;;  %1675 = vmatprep.subr.bf16.mxu1 (!%p523_p3), %v1859_v1  ;;  %1691 = vmatprep.subr.bf16.mxu0 (!%p523_p3), %v1859_v1  ;;  %v1805_v3 = vld [vmem:[%s2173_s5] sm:$0xff] (!%p523_p3)   ;;  %vm650_vm1 = vcmask (!%p523_p3), 261120   ;;  %s2189_s0 = sld [smem:[#allocation3_spill]] (!%p523_p3)  ;;  %v1806_v6 = vld [vmem:[%s2173_s5 + $0x8] sm:$0xff] (!%p523_p3)   ;;  %vm764_vm2 = vcmask (!%p523_p3), 64512  }
   0x9   : > { %1676 = vmatpush3.bf16.msra.mxu1 (!%p523_p3), %v1803_v0  ;;  %1679 = vmatprep.mubr.msk.bf16.mxu1 (!%p523_p3), %vm1860_vm0, %v1859_v1  ;;  %v1606_v13 = vld [vmem:[%s2172_s4] ss:$0 sm:$0xff] (!%p523_p3)  ;;  %s1861_s28 = smov (!%p523_p3), 112   ;;  %s1862_s29 = smov (!%p523_p3), 120   ;;  %v611_v35 = vshrl.u32 (!%p523_p3), %v610_v34, 7  ;;  %v615_v36 = vand.u32 (!%p523_p3), 127, %v610_v34 }
   0xa   : > { %1677 = vmatprep.subr.bf16.mxu1 (!%p523_p3), %v1859_v1  ;;  %1693 = vmatprep.mubr.msk.bf16.mxu0 (!%p523_p3), %vm1860_vm0, %v1859_v1  ;;  %v1610_v14 = vld [vmem:[%s2174_s6] ss:$0 sm:$0xff] (!%p523_p3)  ;;  %s1865_s20 = smov (!%p523_p3), 80   ;;  %s1866_s21 = smov (!%p523_p3), 72   ;;  %vm829_vm4 = vcmask (!%p523_p3), 1043456   ;;  %vm1217_vm5 = vcmask (!%p523_p3), 130048  }
   0xb   : > { %vm616_vm3 = vcmp.gt.s32.totalorder (!%p523_p3), %v615_v36, %v611_v35  ;;  %s1869_s19 = smov (!%p523_p3), 16   ;;  %vm1219_vm6 = vcmask (!%p523_p3), 195584   ;;  %vm1427_vm7 = vcmask (!%p523_p3), 523264  }
   0xc   : > { %v617_v37 = vsel (!%p523_p3), %vm616_vm3, -1e+09, %v1859_v1 }
   0xd   : > { %1678 = vmatpush3.bf16.msra.mxu1 (!%p523_p3), %v1804_v2 }
   0xe   : > { %1683 = vmatprep.subr.bf16.mxu1 (!%p523_p3), %v1859_v1 }
   0xf   : > { %s2195_s24 = smov (!%p585_p4, %s1849_s24), 1 }
  0x10   : > { %s1995_s18 = sshll.u32 %s2195_s24, 3  ;;  %s598_s1 = scalar_lea.vmem %s2170_s2, %s2195_s24 }
  0x11   : > { %s591_s23 = scalar_lea.vmem %s2188_s22, %s1995_s18  ;;  %s595_s30 = scalar_lea.vmem %s2189_s0, %s1995_s18  ;;  %v1605_v38 = vld [vmem:[%s598_s1] ss:$0 sm:$0xff] }
  0x12   : > { %v2005_v4 = vld [vmem:[%s591_s23] sm:$0xff]  ;;  %s1863_s0 = smov 104   ;;  %v625_v39 = vadd.f32 %v1605_v38, %v617_v37  ;;  %s1864_s24 = smov 96  }
  0x13   : > { %v626_v5 = vpack.c.bf16 %v2005_v4, %v2005_v4  ;;  %v608_v7 = vld [vmem:[%s595_s30] sm:$0xff]  ;;  %s1867_s22 = smov 88   ;;  %s1870_s1 = smov 24  }
  0x14   : > { %v696_v8 = vpack.c.bf16 %v608_v7, %v608_v7 }
  0x15   : > { %1680 = vmatmul.mubr.msk.bf16.vlgmr.msra.gmra.mrb[0].mxu1 %vm650_vm1, %v626_v5 }
  0x16   : > { %1684 = vmatpush3.bf16.msra.mxu1 %v1805_v3  ;;  %1687 = vmatprep.mubr.msk.bf16.mxu1 %vm1860_vm0, %v1859_v1 }
  0x17   : > { %1685 = vmatprep.subr.bf16.mxu1 %v1859_v1 }
  0x1a   : > { %1686 = vmatpush3.bf16.msra.mxu1 %v1806_v6 }
  0x1b   : > { %1697 = vmatprep.subr.bf16.mxu1 %v1859_v1 }
  0x1d   : > { %1688 = vmatmul.mubr.msk.bf16.vlgmr.msra.gmra.mrb[4].mxu1 %vm650_vm1, %v696_v8 }
  0x1e   : > { %1699 = vmatprep.mubr.msk.bf16.mxu1 %vm1860_vm0, %v1859_v1 }
  0xe8   : > { %v688_v9 = vpop.f32.mrb[0].mxu1 }
  0xe9   : > { %v1681_v10 = vpop.f32.mrb[1].mxu1  ;;  %v689_v15 = vadd.f32 %v1606_v13, %v688_v9 }
  0xea   : > { %v691_v11 = vpop.f32.mrb[2].mxu1 }
  0xeb   : > { %v1682_v12 = vpop.f32.mrb[3].mxu1  ;;  %v694_v20 = vmul.f32 0.35355338, %v689_v15 }
  0xed   : > { %v695_v24 = vpack.c.bf16 %v694_v20, %v694_v20 }
  0xf0   : > { %v757_v16 = vpop.f32.mrb[4].mxu1 }
  0xf1   : > { %v758_v17 = vadd.f32 %v1610_v14, %v757_v16  ;;  %v1689_v18 = vpop.f32.mrb[5].mxu1 }
  0xf2   : > { %v760_v19 = vpop.f32.mrb[6].mxu1 }
  0xf3   : > { %v2030_v21 = vpack.c.bf16 %v758_v17, %v758_v17  ;;  %v1690_v22 = vpop.f32.mrb[7].mxu1 }
  0xf5   : > { %986 = vrot.lane.b32.xlu1 %v2030_v21, %s1861_s28  ;;  %876 = vrot.lane.b32.xlu0 %v2030_v21, %s1862_s29  ;;  %v769_v23 = vsel %vm764_vm2, %v2030_v21, 0 }
  0xf6   : > { %1692 = vmatpush3.bf16.xpose.msra.mxu0 %v769_v23 }
  0xf7   : > { %1703 = vmatprep.subr.bf16.mxu0 %v1859_v1 }
  0xf9   : > { %984 = vrot.lane.b32.xlu1 %v695_v24, %s1861_s28  ;;  %874 = vrot.lane.b32.xlu0 %v695_v24, %s1862_s29  ;;  %s1868_s29 = smov 8  }
  0xfd   : > { %1094 = vrot.lane.b32.xlu1 %v695_v24, %s1863_s0  ;;  %1096 = vrot.lane.b32.xlu0 %v2030_v21, %s1863_s0 }
  0xfe   : > { %1694 = vmatmul.mubr.msk.bf16.vlgmr.msra.gmra.mrb[0].mxu0 %vm764_vm2, %v695_v24 }
  0xff   : > { %1705 = vmatprep.mubr.msk.bf16.mxu0 %vm1860_vm0, %v1859_v1 }
 0x167   : > { %v877_v25 = vpop.permute.xlu0 %876  ;;  %v987_v27 = vpop.permute.xlu1 %986 }
 0x168   : > { %v882_v26 = vsel %vm764_vm2, %v877_v25, 0  ;;  %v992_v29 = vsel %vm764_vm2, %v987_v27, 0 }
 0x169   : > { %1704 = vmatpush3.bf16.xpose.msra.mxu0 %v882_v26 }
 0x16a   : > { %1715 = vmatprep.subr.bf16.mxu0 %v1859_v1 }
 0x16b   : > { %v875_v28 = vpop.permute.xlu0 %874  ;;  %v985_v31 = vpop.permute.xlu1 %984 }
 0x16f   : > { %v1097_v30 = vpop.permute.xlu0 %1096  ;;  %v1095_v33 = vpop.permute.xlu1 %1094 }
 0x170   : > { %1706 = vmatmul.mubr.msk.bf16.vlgmr.msra.gmra.mrb[4].mxu0 %vm764_vm2, %v875_v28  ;;  %v1102_v32 = vsel %vm764_vm2, %v1097_v30, 0 }
 0x171   : > { %1716 = vmatpush3.bf16.xpose.msra.mxu0 %v992_v29  ;;  %1717 = vmatprep.mubr.msk.bf16.mxu0 %vm1860_vm0, %v1859_v1 }
 0x172   : > { %1727 = vmatprep.subr.bf16.mxu0 %v1859_v1 }
 0x178   : > { %1718 = vmatmul.mubr.msk.bf16.vlgmr.msra.gmra.mrb[8].mxu0 %vm764_vm2, %v985_v31 }
 0x179   : > { %1728 = vmatpush3.bf16.xpose.msra.mxu0 %v1102_v32  ;;  %1729 = vmatprep.mubr.msk.bf16.mxu0 %vm1860_vm0, %v1859_v1 }
 0x17a   : > { %1739 = vmatprep.subr.bf16.mxu0 %v1859_v1 }
 0x180   : > { %1730 = vmatmul.mubr.msk.bf16.vlgmr.msra.gmra.mrb[12].mxu0 %vm764_vm2, %v1095_v33 }
 0x181   : > { %1743 = vmatprep.mubr.msk.bf16.mxu0 %vm1860_vm0, %v1859_v1 }
 0x1d1   : > { %v805_v40 = vpop.f32.mrb[0].mxu0 }
 0x1d2   : > { %v806_v41 = vadd.f32 %v805_v40, %v625_v39  ;;  %v1695_v42 = vpop.f32.mrb[1].mxu0 }
 0x1d3   : > { %v808_v43 = vpop.f32.mrb[2].mxu0 }
 0x1d4   : > { %v1696_v44 = vpop.f32.mrb[3].mxu0  ;;  %v811_v45 = vsel %vm764_vm2, %v806_v41, -inf }
 0x1d5   : > { %812 = vmax.xlane.f32.xlu0 %v811_v45 }
 0x243   : > { %v918_v46 = vpop.f32.mrb[4].mxu0 }
 0x244   : > { %v919_v47 = vadd.f32 %v918_v46, %v625_v39  ;;  %v1707_v48 = vpop.f32.mrb[5].mxu0 }
 0x245   : > { %v921_v49 = vpop.f32.mrb[6].mxu0 }
 0x246   : > { %v1708_v50 = vpop.f32.mrb[7].mxu0  ;;  %v924_v51 = vsel %vm764_vm2, %v919_v47, -inf }
 0x247   : > { %925 = vmax.xlane.f32.xlu1 %v924_v51  ;;  %v1807_v50 = vld [vmem:[%s2175_s7] sm:$0xff]  }
 0x248   : > { %1740 = vmatpush3.bf16.msra.mxu0 %v1807_v50 }
 0x249   : > { %1741 = vmatprep.subr.bf16.mxu0 %v1859_v1 }
 0x24b   : > { %v1028_v52 = vpop.f32.mrb[8].mxu0 }
 0x24c   : > { %v1029_v53 = vadd.f32 %v1028_v52, %v625_v39  ;;  %v1719_v54 = vpop.f32.mrb[9].mxu0 }
 0x24d   : > { %v1031_v55 = vpop.f32.mrb[10].mxu0 }
 0x24e   : > { %v1720_v56 = vpop.f32.mrb[11].mxu0  ;;  %v1034_v57 = vsel %vm764_vm2, %v1029_v53, -inf  ;;  %v1808_v55 = vld [vmem:[%s2175_s7 + $0x8] sm:$0xff]  }
 0x24f   : > { %1035 = vmax.xlane.f32.xlu0 %v1034_v57  ;;  %1742 = vmatpush3.bf16.msra.mxu0 %v1808_v55 }
 0x250   : > { %1755 = vmatprep.subr.bf16.mxu0 %v1859_v1 }
 0x253   : > { %v1138_v58 = vpop.f32.mrb[12].mxu0 }
 0x254   : > { %v1139_v59 = vadd.f32 %v1138_v58, %v625_v39  ;;  %v1731_v60 = vpop.f32.mrb[13].mxu0 }
 0x255   : > { %v1141_v61 = vpop.f32.mrb[14].mxu0 }
 0x256   : > { %v1732_v62 = vpop.f32.mrb[15].mxu0  ;;  %v1144_v63 = vsel %vm764_vm2, %v1139_v59, -inf }
 0x257   : > { %1145 = vmax.xlane.f32.xlu0 %v1144_v63 }
 0x262   : > { %v813_v0 = vpop.xlane.xlu0 %812 }
 0x263   : > { %v814_v2 = vsub.f32 %v806_v41, %v813_v0 }
 0x265   : > { %v815_v3 = vmul.f32 1.442695, %v814_v2 }
 0x267   : > { %1815 = vpow2.f32 %v815_v3 }
 0x271   : > { %v1816_v5 = vpop.eup %1815 }
 0x272   : > { %v817_v6 = vsel %vm764_vm2, %v1816_v5, 0.0 }
 0x273   : > { %818 = vadd.xlane.f32.xlu1 %v817_v6 }
 0x284   : > { %824 = vrot.lane.b32.xlu1 %v2030_v21, %s1864_s24 }
 0x2d4   : > { %v926_v7 = vpop.xlane.xlu1 %925 }
 0x2d5   : > { %v927_v8 = vsub.f32 %v919_v47, %v926_v7 }
 0x2d7   : > { %v928_v9 = vmul.f32 1.442695, %v927_v8 }
 0x2d9   : > { %1817 = vpow2.f32 %v928_v9  ;;  %v1622_v9 = vld [vmem:[%s2176_s8] ss:$0 sm:$0xff] }
 0x2dc   : > { %v1036_v10 = vpop.xlane.xlu0 %1035 }
 0x2dd   : > { %v1037_v11 = vsub.f32 %v1029_v53, %v1036_v10 }
 0x2df   : > { %v1038_v12 = vmul.f32 1.442695, %v1037_v11 }
 0x2e1   : > { %1819 = vpow2.f32 %v1038_v12 }
 0x2e3   : > { %v1818_v13 = vpop.eup %1817 }
 0x2e4   : > { %v1146_v14 = vpop.xlane.xlu0 %1145  ;;  %v930_v15 = vsel %vm764_vm2, %v1818_v13, 0.0 }
 0x2e5   : > { %v1147_v16 = vsub.f32 %v1139_v59, %v1146_v14  ;;  %931 = vadd.xlane.f32.xlu0 %v930_v15 }
 0x2e7   : > { %v1148_v17 = vmul.f32 1.442695, %v1147_v16 }
 0x2e9   : > { %1821 = vpow2.f32 %v1148_v17 }
 0x2eb   : > { %v1820_v18 = vpop.eup %1819 }
 0x2ec   : > { %v1040_v19 = vsel %vm764_vm2, %v1820_v18, 0.0 }
 0x2ed   : > { %1041 = vadd.xlane.f32.xlu1 %v1040_v19 }
 0x2f3   : > { %v1822_v20 = vpop.eup %1821 }
 0x2f4   : > { %v1150_v22 = vsel %vm764_vm2, %v1822_v20, 0.0 }
 0x2f5   : > { %1151 = vadd.xlane.f32.xlu0 %v1150_v22 }
 0x2fe   : > { %1046 = vrot.lane.b32.xlu1 %v2030_v21, %s1865_s20 }
 0x300   : > { %v819_v23 = vpop.xlane.xlu1 %818 }
 0x301   : > { %1823 = vrcp.f32 %v819_v23  ;;  %v1809_v23 = vld [vmem:[%s2177_s9] sm:$0xff]  }
 0x302   : > { %1156 = vrot.lane.b32.xlu1 %v2030_v21, %s1866_s21 }
 0x304   : > { %v825_v24 = vpop.permute.xlu1 %824 }
 0x305   : > { %v831_v25 = vsel %vm829_vm4, %v825_v24, 0  ;;  %v1810_v24 = vld [vmem:[%s2177_s9 + $0x8] sm:$0xff]  }
 0x306   : > { %1698 = vmatpush3.bf16.msra.mxu1 %v831_v25  ;;  %v1812_v25 = vld [vmem:[%s2179_s11 + $0x8] sm:$0xff]  }
 0x307   : > { %1709 = vmatprep.subr.bf16.mxu1 %v1859_v1 }
 0x30b   : > { %v1824_v26 = vpop.eup %1823  ;;  %936 = vrot.lane.b32.xlu0 %v2030_v21, %s1867_s22 }
 0x30c   : > { %v821_v27 = vmul.f32 %v1824_v26, %v1816_v5 }
 0x30e   : > { %v822_v28 = vpack.c.bf16 %v821_v27, %v821_v27 }
 0x310   : > { %1700 = vmatmul.mubr.msk.bf16.vlgmr.msra.gmra.mrb[8].mxu1 %vm764_vm2, %v822_v28 }
 0x311   : > { %1711 = vmatprep.mubr.msk.bf16.mxu1 %vm1860_vm0, %v1859_v1 }
 0x372   : > { %v932_v29 = vpop.xlane.xlu0 %931 }
 0x373   : > { %1825 = vrcp.f32 %v932_v29 }
 0x37a   : > { %v1042_v30 = vpop.xlane.xlu1 %1041 }
 0x37b   : > { %1827 = vrcp.f32 %v1042_v30  ;;  %v1626_v30 = vld [vmem:[%s2181_s13] ss:$0 sm:$0xff] }
 0x37d   : > { %v1826_v31 = vpop.eup %1825 }
 0x37e   : > { %v934_v33 = vmul.f32 %v1826_v31, %v1818_v13  ;;  %v1047_v36 = vpop.permute.xlu1 %1046 }
 0x37f   : > { %v1052_v38 = vsel %vm829_vm4, %v1047_v36, 0  ;;  %v1813_v36 = vld [vmem:[%s2179_s11 + $0x10] sm:$0xff]  }
 0x380   : > { %v935_v21 = vpack.c.bf16 %v934_v33, %v934_v33 }
 0x382   : > { %v1152_v32 = vpop.xlane.xlu0 %1151  ;;  %v1157_v40 = vpop.permute.xlu1 %1156 }
 0x383   : > { %1829 = vrcp.f32 %v1152_v32  ;;  %v1162_v43 = vsel %vm829_vm4, %v1157_v40, 0  ;;  %v1627_v32 = vld [vmem:[%s2182_s14] ss:$0 sm:$0xff] }
 0x385   : > { %v1828_v37 = vpop.eup %1827 }
 0x386   : > { %v937_v34 = vpop.permute.xlu0 %936  ;;  %v1044_v39 = vmul.f32 %v1828_v37, %v1820_v18  ;;  %v1628_v37 = vld [vmem:[%s2178_s10] ss:$0 sm:$0xff] }
 0x387   : > { %v942_v35 = vsel %vm829_vm4, %v937_v34, 0 }
 0x388   : > { %1710 = vmatpush3.bf16.msra.mxu1 %v942_v35  ;;  %v1045_v41 = vpack.c.bf16 %v1044_v39, %v1044_v39 }
 0x389   : > { %1721 = vmatprep.subr.bf16.mxu1 %v1859_v1 }
 0x38b   : > { %1712 = vmatmul.mubr.msk.bf16.vlgmr.msra.gmra.mrb[12].mxu1 %vm764_vm2, %v935_v21  ;;  %v1814_v21 = vld [vmem:[%s2179_s11 + $0x18] sm:$0xff]  }
 0x38c   : > { %1722 = vmatpush3.bf16.msra.mxu1 %v1052_v38  ;;  %1723 = vmatprep.mubr.msk.bf16.mxu1 %vm1860_vm0, %v1859_v1 }
 0x38d   : > { %1733 = vmatprep.subr.bf16.mxu1 %v1859_v1  ;;  %v1830_v42 = vpop.eup %1829 }
 0x38e   : > { %v1154_v44 = vmul.f32 %v1830_v42, %v1822_v20 }
 0x390   : > { %v1155_v45 = vpack.c.bf16 %v1154_v44, %v1154_v44 }
 0x393   : > { %1724 = vmatmul.mubr.msk.bf16.vlgmr.msra.gmra.mrb[16].mxu1 %vm764_vm2, %v1045_v41 }
 0x394   : > { %1734 = vmatpush3.bf16.msra.mxu1 %v1162_v43  ;;  %1735 = vmatprep.mubr.msk.bf16.mxu1 %vm1860_vm0, %v1859_v1 }
 0x395   : > { %1747 = vmatprep.subr.bf16.mxu1 %v1859_v1 }
 0x39b   : > { %1736 = vmatmul.mubr.msk.bf16.vlgmr.msra.gmra.mrb[20].mxu1 %vm764_vm2, %v1155_v45 }
 0x39c   : > { %1751 = vmatprep.mubr.msk.bf16.mxu1 %vm1860_vm0, %v1859_v1  ;;  %1748 = vmatpush3.bf16.msra.mxu1 %v1809_v23 }
 0x39d   : > { %1749 = vmatprep.subr.bf16.mxu1 %v1859_v1 }
 0x3a0   : > { %1750 = vmatpush3.bf16.msra.mxu1 %v1810_v24 }
 0x3e3   : > { %v867_v46 = vpop.f32.mrb[8].mxu1 }
 0x3e4   : > { %v1701_v47 = vpop.f32.mrb[9].mxu1 }
 0x3e5   : > { %v870_v48 = vpop.f32.mrb[10].mxu1 }
 0x3e6   : > { %v1702_v49 = vpop.f32.mrb[11].mxu1 }
 0x45e   : > { %v978_v51 = vpop.f32.mrb[12].mxu1 }
 0x45f   : > { %1205 = vrot.lane.b32.xlu0 %v978_v51, %s1868_s29  ;;  %v1713_v52 = vpop.f32.mrb[13].mxu1  ;;  %s605_s29 = scalar_lea.vmem %s2185_s17, %s1995_s18 }
 0x460   : > { %v981_v53 = vpop.f32.mrb[14].mxu1 }
 0x461   : > { %v1714_v54 = vpop.f32.mrb[15].mxu1 }
 0x466   : > { %v1088_v56 = vpop.f32.mrb[16].mxu1 }
 0x467   : > { %1209 = vrot.lane.b32.xlu1 %v1088_v56, %s1869_s19  ;;  %v1725_v57 = vpop.f32.mrb[17].mxu1 }
 0x468   : > { %v1091_v58 = vpop.f32.mrb[18].mxu1 }
 0x469   : > { %v1726_v59 = vpop.f32.mrb[19].mxu1 }
 0x46e   : > { %v1198_v60 = vpop.f32.mrb[20].mxu1 }
 0x46f   : > { %1213 = vrot.lane.b32.xlu0 %v1198_v60, %s1870_s1  ;;  %v1737_v61 = vpop.f32.mrb[21].mxu1 }
 0x470   : > { %v1201_v62 = vpop.f32.mrb[22].mxu1  ;;  %v1638_v61 = vld [vmem:[%s2183_s15] ss:$0 sm:$0xff] }
 0x471   : > { %v1738_v63 = vpop.f32.mrb[23].mxu1 }
 0x472   : > { %v1639_v63 = vld [vmem:[%s2184_s16] ss:$0 sm:$0xff] }
 0x4d1   : > { %v1206_v0 = vpop.permute.xlu0 %1205 }
 0x4d2   : > { %v1216_v3 = vsel %vm764_vm2, %v867_v46, %v1206_v0 }
 0x4d9   : > { %v1210_v2 = vpop.permute.xlu1 %1209 }
 0x4da   : > { %v1218_v5 = vsel %vm1217_vm5, %v1216_v3, %v1210_v2 }
 0x4e1   : > { %v1214_v6 = vpop.permute.xlu0 %1213 }
 0x4e2   : > { %v1220_v7 = vsel %vm1219_vm6, %v1218_v5, %v1214_v6 }
 0x4e3   : > { %v1221_v8 = vpack.c.bf16 %v1220_v7, %v1220_v7 }
 0x4e5   : > { %1744 = vmatmul.mubr.msk.bf16.vlgmr.msra.gmra.mrb[16].mxu0 %vm650_vm1, %v1221_v8 }
 0x4e6   : > { %1763 = vmatprep.mubr.msk.bf16.mxu0 %vm1860_vm0, %v1859_v1 }
 0x5b8   : > { %v1282_v10 = vpop.f32.mrb[16].mxu0 }
 0x5b9   : > { %v1283_v11 = vadd.f32 %v1622_v9, %v1282_v10  ;;  %v1745_v12 = vpop.f32.mrb[17].mxu0 }
 0x5ba   : > { %v1285_v13 = vpop.f32.mrb[18].mxu0 }
 0x5bb   : > { %v1746_v14 = vpop.f32.mrb[19].mxu0  ;;  %v1288_v15 = vadd.f32 %v1283_v11, %v2005_v4  ;;  %v1811_v4 = vld [vmem:[%s2179_s11] sm:$0xff]  }
 0x5bc   : > { %1756 = vmatpush3.bf16.msra.mxu0 %v1811_v4 }
 0x5bd   : > { %v1289_v16 = vsel %vm650_vm1, %v1288_v15, 0.0  ;;  %1757 = vmatprep.subr.bf16.mxu0 %v1859_v1 }
 0x5be   : > { %1290 = vadd.xlane.f32.xlu1 %v1289_v16 }
 0x5c0   : > { %1758 = vmatpush3.bf16.msra.mxu0 %v1812_v25 }
 0x5c1   : > { %1759 = vmatprep.subr.bf16.mxu0 %v1859_v1 }
 0x5c4   : > { %1760 = vmatpush3.bf16.msra.mxu0 %v1813_v36 }
 0x5c5   : > { %1761 = vmatprep.subr.bf16.mxu0 %v1859_v1  ;;  %v1632_v1 = vld [vmem:[%s2180_s12] ss:$0 sm:$0xff] }
 0x5c8   : > { %1762 = vmatpush3.bf16.msra.mxu0 %v1814_v21 }
 0x64b   : > { %v1291_v17 = vpop.xlane.xlu1 %1290 }
 0x64c   : > { %v1293_v18 = vmul.f32 0.03125, %v1291_v17 }
 0x64e   : > { %v1294_v19 = vsub.f32 %v1288_v15, %v1293_v18 }
 0x650   : > { %v1295_v20 = vmul.f32 %v1294_v19, %v1294_v19 }
 0x652   : > { %v1296_v22 = vsel %vm650_vm1, %v1295_v20, 0.0 }
 0x653   : > { %1297 = vadd.xlane.f32.xlu0 %v1296_v22 }
 0x6e0   : > { %v1298_v26 = vpop.xlane.xlu0 %1297 }
 0x6e1   : > { %v1299_v27 = vmul.f32 0.03125, %v1298_v26 }
 0x6e3   : > { %v1300_v28 = vadd.f32 1e-05, %v1299_v27 }
 0x6e5   : > { %1831 = vrsqrt.f32 %v1300_v28 }
 0x6ef   : > { %v1832_v29 = vpop.eup %1831 }
 0x6f0   : > { %v1302_v31 = vmul.f32 %v1832_v29, %v1294_v19 }
 0x6f2   : > { %v1310_v33 = vmul.f32 %v1626_v30, %v1302_v31 }
 0x6f4   : > { %v1318_v34 = vadd.f32 %v1627_v32, %v1310_v33 }
 0x6f6   : > { %v1319_v35 = vpack.c.bf16 %v1318_v34, %v1318_v34 }
 0x6f8   : > { %1752 = vmatmul.mubr.msk.bf16.vlgmr.msra.gmra.mrb[24].mxu1 %vm650_vm1, %v1319_v35 }
 0x7cb   : > { %v1380_v38 = vpop.f32.mrb[24].mxu1 }
 0x7cc   : > { %v1381_v39 = vadd.f32 %v1628_v37, %v1380_v38  ;;  %v1753_v40 = vpop.f32.mrb[25].mxu1 }
 0x7cd   : > { %v1383_v41 = vpop.f32.mrb[26].mxu1 }
 0x7ce   : > { %v1386_v42 = vmax.f32 %v1381_v39, 0.0  ;;  %v1754_v43 = vpop.f32.mrb[27].mxu1 }
 0x7d0   : > { %v1387_v44 = vpack.c.bf16 %v1386_v42, %v1386_v42 }
 0x7d2   : > { %1764 = vmatmul.mubr.msk.bf16.vlgmr.msra.gmra.mrb[20].mxu0 %vm1427_vm7, %v1387_v44 }
 0x8a5   : > { %v1465_v45 = vpop.f32.mrb[20].mxu0 }
 0x8a6   : > { %v1466_v46 = vadd.f32 %v1632_v1, %v1465_v45  ;;  %v1765_v47 = vpop.f32.mrb[21].mxu0 }
 0x8a7   : > { %v1468_v48 = vpop.f32.mrb[22].mxu0 }
 0x8a8   : > { %v1766_v49 = vpop.f32.mrb[23].mxu0  ;;  %v1471_v50 = vadd.f32 %v1466_v46, %v1318_v34 }
 0x8aa   : > { %v1472_v51 = vsel %vm650_vm1, %v1471_v50, 0.0 }
 0x8ab   : > { %1473 = vadd.xlane.f32.xlu0 %v1472_v51 }
 0x938   : > { %v1474_v52 = vpop.xlane.xlu0 %1473 }
 0x939   : > { %v1475_v53 = vmul.f32 0.03125, %v1474_v52 }
 0x93b   : > { %v1476_v54 = vsub.f32 %v1471_v50, %v1475_v53 }
 0x93d   : > { %v1477_v55 = vmul.f32 %v1476_v54, %v1476_v54 }
 0x93f   : > { %v1478_v56 = vsel %vm650_vm1, %v1477_v55, 0.0 }
 0x940   : > { %1479 = vadd.xlane.f32.xlu1 %v1478_v56 }
 0x9cd   : > { %v1480_v57 = vpop.xlane.xlu1 %1479 }
 0x9ce   : > { %v1481_v58 = vmul.f32 0.03125, %v1480_v57 }
 0x9d0   : > { %v1482_v59 = vadd.f32 1e-05, %v1481_v58 }
 0x9d2   : > { %1833 = vrsqrt.f32 %v1482_v59 }
 0x9dc   : > { %v1834_v60 = vpop.eup %1833 }
 0x9dd   : > { %v1484_v62 = vmul.f32 %v1834_v60, %v1476_v54 }
 0x9df   : > { %v1492_v0 = vmul.f32 %v1638_v61, %v1484_v62 }
 0x9e1   : > { %v1500_v2 = vadd.f32 %v1639_v63, %v1492_v0 }
 0x9e3   : > { %1501 = vst.msk [vmem:[%s605_s29] sm:$0xff] %vm650_vm1, %v1500_v2 }
 0x9e4 PF: > { %s27_s26 = sadd.s32 1, %s1857_s26   ;;  %s2190_s24 = smov %s1853_s25 }
 0x9e5   : > { %p24_p5 = scmp.ge.s32.totalorder %s27_s26, 4   ;;  %s2191_s25 = smov %s2193_s27 }
 0x9e7   :  { %26 = sbr.rel (!%p24_p5) target bundleno = 3 (0x3), region = 124 }

</bundles_post_ra>
